<compile_context>
chip_gen: v7x
topology: tpu7x:2x2x1
jax: 0.10.0
libtpu: 0.0.40
codegen_flags: <defaults>
</compile_context>

<pallas_src>
import math

import jax
import jax.numpy as jnp
from jax import lax
from jax.experimental import pallas as pl
from jax.experimental.pallas import tpu as pltpu


# ---------------------------------------------------------------------------
# Pallas kernel: whole node-major GCN stack (XW -> A@ -> +bias -> ReLU) + head
# ---------------------------------------------------------------------------
def _make_alpolicy2_kernel(num_layers):
    def kernel(x_ref, adj_ref, rowsum_ref, *refs):
        # refs = (Wblk_0, btile_0, ..., Wblk_{L-1}, btile_{L-1}, wout_t, out_ref)
        out_ref = refs[-1]
        wout_ref = refs[-2]

        adj = adj_ref[...]                       # [N, N]    matmul dtype
        rowsum = rowsum_ref[...]                 # [N, 1]    f32 (row sums of adj)
        x = x_ref[...]                           # [N, B*S]  matmul dtype (pre-cast)

        for l in range(num_layers):
            w = refs[2 * l][...]                 # [B*F_in, B*F_out] block-diag, mm dtype
            b = refs[2 * l + 1][...]             # [1, B*F_out]      f32, bias tiled B times

            # Batch-fused feature transform: one MXU matmul, f32 accumulation.
            s = jnp.dot(x, w, preferred_element_type=jnp.float32)          # [N, B*F_out]

            # Shared adjacency applied ONCE for the whole batch (lanes = B*F_out).
            h = jnp.dot(adj, s.astype(adj.dtype),
                        preferred_element_type=jnp.float32)                # [N, B*F_out]

            # Folded bias:  A @ (XW + 1 b)  ==  A @ (XW) + rowsum(A) (outer) b   (f32).
            h = h + rowsum * b

            # ReLU in f32 (VPU, v5e-safe), cast once for the next MXU operand.
            x = jnp.maximum(h, 0.0).astype(adj.dtype)

        # Output head: (kron(I_B, w_out))^T applied as an rhs-transposed dot so the
        # result is already [B, N] -> single lane-dense store, no in-kernel transpose.
        out_ref[...] = lax.dot_general(
            wout_ref[...], x,
            dimension_numbers=(((1,), (1,)), ((), ())),
            preferred_element_type=jnp.float32)

    return kernel


def alpolicy2_forward(state, adj, weights, biases, w_out, *, matmul_dtype=jnp.bfloat16):
    """state: [B, N, statedim] f32, adj: [N, N] f32 (dense stand-in for the sparse adj),
    weights[l]: [F_in_l, F_out_l], biases[l]: [1, F_out_l], w_out: [F_last, 1].
    matmul_dtype: dtype fed to the MXU (bf16 default; f32 accumulation either way).
    Returns: [B, N] f32 (matches PyTorch ALPolicy2.forward output)."""
    B, N, S = state.shape
    num_layers = len(weights)
    mm = matmul_dtype

    # Node-major slab: row n = [state[0,n,:], state[1,n,:], ...]  -> [N, B*S].
    x0 = jnp.transpose(state, (1, 0, 2)).reshape(N, B * S).astype(mm)
    adj_c = adj.astype(mm)
    rowsum = jnp.sum(adj, axis=1, keepdims=True).astype(jnp.float32)        # [N, 1]

    eye_b = jnp.eye(B, dtype=jnp.float32)
    params = []
    for w, b in zip(weights, biases):
        # Block-diagonal weight: one X@W matmul for the whole batch, no reshapes.
        params.append(jnp.kron(eye_b, w.astype(jnp.float32)).astype(mm))    # [B*Fi, B*Fo]
        params.append(jnp.tile(b.astype(jnp.float32).reshape(1, -1), (1, B)))  # [1, B*Fo]
    wout_t = jnp.kron(eye_b, w_out.astype(jnp.float32)).T.astype(mm)        # [B, B*F_last]
    params.append(wout_t)

    # VMEM budget: derived from the real operand footprint, capped at 48 MiB so it
    # always leaves headroom on v7x (64 MiB physical/TC).  On v5e/v6e (128 MiB) the
    # cap could be raised toward ~100 MiB for very large resident adjacencies.
    f_max = max([S] + [w.shape[1] for w in weights])
    act_bytes = 4 * N * B * f_max * 4            # a few f32 activation slabs
    in_bytes = (x0.size * jnp.dtype(mm).itemsize
                + adj_c.size * jnp.dtype(mm).itemsize
                + rowsum.size * 4
                + sum(int(p.size) * jnp.dtype(p.dtype).itemsize for p in params)
                + B * N * 4)
    vmem_limit = int(min(48 * 2**20, max(8 * 2**20, 2 * (in_bytes + act_bytes))))

    vspec = pl.BlockSpec(memory_space=pltpu.MemorySpace.VMEM)
    out = pl.pallas_call(
        _make_alpolicy2_kernel(num_layers),
        out_shape=jax.ShapeDtypeStruct((B, N), jnp.float32),
        # No grid: a single invocation; every operand is loaded into VMEM exactly once.
        in_specs=[vspec] * (3 + len(params)),
        out_specs=vspec,
        compiler_params=pltpu.CompilerParams(vmem_limit_bytes=vmem_limit),
    )(x0, adj_c, rowsum, *params)

    return out                                                              # [B, N]


# ---------------------------------------------------------------------------
# Plain-JAX references.
#   * cast_dtype=None : PyTorch semantics in f32, HIGHEST precision.
#   * cast_dtype=bf16 : mirrors the kernel's numerics exactly (bf16 MXU inputs,
#     f32 accumulation, bias folded post-adjacency as rowsum(A)*b).
# ---------------------------------------------------------------------------
def alpolicy2_reference(state, adj, weights, biases, w_out, cast_dtype=None):
    x = jnp.transpose(state, (1, 0, 2))                                     # [N, B, S]
    N, B, _ = x.shape
    if cast_dtype is None:
        for w, b in zip(weights, biases):
            support = jnp.einsum("nbk,kp->nbp", x, w,
                                 precision=lax.Precision.HIGHEST) + b[0]
            out = jnp.dot(adj, support.reshape(N, -1),
                          precision=lax.Precision.HIGHEST)
            x = jax.nn.relu(out.reshape(N, B, -1))
        y = jnp.einsum("nbf,f->nb", x, w_out[:, 0], precision=lax.Precision.HIGHEST)
        return y.T                                                          # [B, N]

    rowsum = jnp.sum(adj, axis=1)                                           # [N] f32
    adj_c = adj.astype(cast_dtype)
    for w, b in zip(weights, biases):
        s = jnp.einsum("nbk,kp->nbp", x.astype(cast_dtype), w.astype(cast_dtype),
                       preferred_element_type=jnp.float32)
        h = jnp.einsum("nm,mbp->nbp", adj_c, s.astype(cast_dtype),
                       preferred_element_type=jnp.float32)
        h = h + rowsum[:, None, None] * b[0].astype(jnp.float32)
        x = jax.nn.relu(h).astype(cast_dtype)
    y = jnp.einsum("nbf,f->nb", x, w_out[:, 0].astype(cast_dtype),
                   preferred_element_type=jnp.float32)
    return y.T                                                              # [B, N]


# ---------------------------------------------------------------------------
# Deterministic parameter construction (matches module shapes, synthetic init)
# ---------------------------------------------------------------------------
def build_params(key, statedim, pnhid):
    weights, biases = [], []
    dims = [statedim] + list(pnhid)
    for i in range(len(pnhid)):
        key, kw, kb = jax.random.split(key, 3)
        stdv = 1.0 / math.sqrt(dims[i + 1])
        w = jax.random.uniform(kw, (dims[i], dims[i + 1]),
                               minval=-stdv, maxval=stdv, dtype=jnp.float32)
        # (PyTorch zero-inits the GCN bias; small random values here so the bias
        #  path is actually exercised by the correctness check.)
        b = jax.random.uniform(kb, (1, dims[i + 1]),
                               minval=-stdv, maxval=stdv, dtype=jnp.float32)
        weights.append(w)
        biases.append(b)
    key, ko = jax.random.split(key)
    bound = 1.0 / math.sqrt(pnhid[-1])
    w_out = jax.random.uniform(ko, (pnhid[-1], 1),
                               minval=-bound, maxval=bound, dtype=jnp.float32)
    return weights, biases, w_out


if __name__ == "__main__":
    # args: use_entropy=True, use_degree=True, use_local_diversity=True,
    #       use_select=False  -> statedim = 1 + 1 + 2 = 4
    #       pnhid = [32, 32], batch_size = 2
    # NOTE: at these demo sizes the whole problem is ~1 vreg tile of work and is
    #       launch-overhead bound; the tuning above matters at realistic N (100s-1000s).
    statedim = 4
    pnhid = [32, 32]
    B, N = 2, 16

    key = jax.random.PRNGKey(0)
    k_state, k_adj, k_param = jax.random.split(key, 3)

    state = jax.random.normal(k_state, (B, N, statedim), dtype=jnp.float32)
    # Dense row-stochastic adjacency standing in for the sparse adj used by spmm.
    adj_raw = jax.random.uniform(k_adj, (N, N), dtype=jnp.float32)
    adj = adj_raw / jnp.sum(adj_raw, axis=1, keepdims=True)

    weights, biases, w_out = build_params(k_param, statedim, pnhid)
    ref_f32 = alpolicy2_reference(state, adj, weights, biases, w_out)

    # f32 MXU path: must track the f32 reference closely.
    out_f32 = jax.block_until_ready(
        alpolicy2_forward(state, adj, weights, biases, w_out, matmul_dtype=jnp.float32))
    assert out_f32.shape == (B, N)
    assert jnp.allclose(out_f32, ref_f32, rtol=1e-3, atol=1e-4), (out_f32, ref_f32)

    # bf16 MXU path (f32 accumulation): compare against a reference with identical
    # casting, plus a loose sanity check against the pure-f32 reference.
    out_bf16 = jax.block_until_ready(
        alpolicy2_forward(state, adj, weights, biases, w_out, matmul_dtype=jnp.bfloat16))
    ref_bf16 = alpolicy2_reference(state, adj, weights, biases, w_out,
                                   cast_dtype=jnp.bfloat16)
    assert out_bf16.shape == (B, N)
    assert jnp.allclose(out_bf16, ref_bf16, rtol=2e-3, atol=2e-3), (out_bf16, ref_bf16)
    assert jnp.allclose(out_bf16, ref_f32, rtol=5e-2, atol=5e-2), (out_bf16, ref_f32)

    print("KERNEL_OK")
</pallas_src>

<mosaic_0001>
module attributes {stable_mosaic.version = 11 : i64} {
  func.func @kernel(%arg0: memref<16x8xf32, #tpu.memory_space<vmem>>, %arg1: memref<16x16xf32, #tpu.memory_space<vmem>>, %arg2: memref<16x1xf32, #tpu.memory_space<vmem>>, %arg3: memref<8x64xf32, #tpu.memory_space<vmem>>, %arg4: memref<1x64xf32, #tpu.memory_space<vmem>>, %arg5: memref<64x64xf32, #tpu.memory_space<vmem>>, %arg6: memref<1x64xf32, #tpu.memory_space<vmem>>, %arg7: memref<2x64xf32, #tpu.memory_space<vmem>>, %arg8: memref<2x16xf32, #tpu.memory_space<vmem>>) attributes {dimension_semantics = [], scalar_prefetch = 0 : i64, scratch_operands = 0 : i64, tpu.core_type = #tpu.core_type<tc>} {
    %c0 = arith.constant 0 : index
    %c0_0 = arith.constant 0 : index
    %0 = vector.load %arg1[%c0, %c0_0] : memref<16x16xf32, #tpu.memory_space<vmem>>, vector<16x16xf32>
    %c0_1 = arith.constant 0 : index
    %c0_2 = arith.constant 0 : index
    %1 = vector.load %arg2[%c0_1, %c0_2] : memref<16x1xf32, #tpu.memory_space<vmem>>, vector<16x1xf32>
    %c0_3 = arith.constant 0 : index
    %c0_4 = arith.constant 0 : index
    %2 = vector.load %arg0[%c0_3, %c0_4] : memref<16x8xf32, #tpu.memory_space<vmem>>, vector<16x8xf32>
    %c0_5 = arith.constant 0 : index
    %c0_6 = arith.constant 0 : index
    %3 = vector.load %arg3[%c0_5, %c0_6] : memref<8x64xf32, #tpu.memory_space<vmem>>, vector<8x64xf32>
    %c0_7 = arith.constant 0 : index
    %c0_8 = arith.constant 0 : index
    %4 = vector.load %arg4[%c0_7, %c0_8] : memref<1x64xf32, #tpu.memory_space<vmem>>, vector<1x64xf32>
    %cst = arith.constant dense<0.000000e+00> : vector<16x64xf32>
    %5 = tpu.matmul %2, %3, %cst {dimension_numbers = #tpu.dot_dimension_numbers<[1], [0], [0], [1], [0, 0, 1, 1], [], []>} : vector<16x8xf32>, vector<8x64xf32>, vector<16x64xf32> -> vector<16x64xf32>
    %cst_9 = arith.constant dense<0.000000e+00> : vector<16x64xf32>
    %6 = tpu.matmul %0, %5, %cst_9 {dimension_numbers = #tpu.dot_dimension_numbers<[1], [0], [0], [1], [0, 0, 1, 1], [], []>} : vector<16x16xf32>, vector<16x64xf32>, vector<16x64xf32> -> vector<16x64xf32>
    %7 = vector.broadcast %1 : vector<16x1xf32> to vector<16x64xf32>
    %8 = vector.broadcast %4 : vector<1x64xf32> to vector<16x64xf32>
    %9 = arith.mulf %7, %8 : vector<16x64xf32>
    %10 = arith.addf %6, %9 : vector<16x64xf32>
    %cst_10 = arith.constant 0.000000e+00 : f32
    %11 = vector.broadcast %cst_10 : f32 to vector<16x64xf32>
    %12 = arith.maximumf %10, %11 : vector<16x64xf32>
    %c0_11 = arith.constant 0 : index
    %c0_12 = arith.constant 0 : index
    %13 = vector.load %arg5[%c0_11, %c0_12] : memref<64x64xf32, #tpu.memory_space<vmem>>, vector<64x64xf32>
    %c0_13 = arith.constant 0 : index
    %c0_14 = arith.constant 0 : index
    %14 = vector.load %arg6[%c0_13, %c0_14] : memref<1x64xf32, #tpu.memory_space<vmem>>, vector<1x64xf32>
    %cst_15 = arith.constant dense<0.000000e+00> : vector<16x64xf32>
    %15 = tpu.matmul %12, %13, %cst_15 {dimension_numbers = #tpu.dot_dimension_numbers<[1], [0], [0], [1], [0, 0, 1, 1], [], []>} : vector<16x64xf32>, vector<64x64xf32>, vector<16x64xf32> -> vector<16x64xf32>
    %cst_16 = arith.constant dense<0.000000e+00> : vector<16x64xf32>
    %16 = tpu.matmul %0, %15, %cst_16 {dimension_numbers = #tpu.dot_dimension_numbers<[1], [0], [0], [1], [0, 0, 1, 1], [], []>} : vector<16x16xf32>, vector<16x64xf32>, vector<16x64xf32> -> vector<16x64xf32>
    %17 = vector.broadcast %1 : vector<16x1xf32> to vector<16x64xf32>
    %18 = vector.broadcast %14 : vector<1x64xf32> to vector<16x64xf32>
    %19 = arith.mulf %17, %18 : vector<16x64xf32>
    %20 = arith.addf %16, %19 : vector<16x64xf32>
    %cst_17 = arith.constant 0.000000e+00 : f32
    %21 = vector.broadcast %cst_17 : f32 to vector<16x64xf32>
    %22 = arith.maximumf %20, %21 : vector<16x64xf32>
    %c0_18 = arith.constant 0 : index
    %c0_19 = arith.constant 0 : index
    %23 = vector.load %arg7[%c0_18, %c0_19] : memref<2x64xf32, #tpu.memory_space<vmem>>, vector<2x64xf32>
    %cst_20 = arith.constant dense<0.000000e+00> : vector<2x16xf32>
    %24 = tpu.matmul %23, %22, %cst_20 {dimension_numbers = #tpu.dot_dimension_numbers<[1], [1], [0], [0], [0, 0, 1, 0], [], []>} : vector<2x64xf32>, vector<16x64xf32>, vector<2x16xf32> -> vector<2x16xf32>
    %c0_21 = arith.constant 0 : index
    %c0_22 = arith.constant 0 : index
    %25 = vector.load %arg8[%c0_21, %c0_22] : memref<2x16xf32, #tpu.memory_space<vmem>>, vector<2x16xf32>
    tpu.vector_store %arg8[%c0_21, %c0_22], %24 {strides = array<i32>} : memref<2x16xf32, #tpu.memory_space<vmem>>, vector<2x16xf32>,
    return
  }
}

</mosaic_0001>

<bundles_post_ra>
// kernel: tpu_custom_call.1
= control target key start
LH: loop header
LB: loop body
LE: loop exit
PB: predicated region body
PF: predicated region fallthrough
CT: control target
= control target key end

     0   :  { %13 = vsyncpa [#allocation3], 0  ;;  %s792_s0 = inlined_call_operand.vmem [shape: f32[16,8], index: 0, kind: input, shape index: {}]   ;;  %s793_s1 = inlined_call_operand.vmem [shape: f32[16,16], index: 1, kind: input, shape index: {}]   ;;  %s794_s2 = inlined_call_operand.vmem [shape: f32[16,1], index: 2, kind: input, shape index: {}]   ;;  %s795_s3 = inlined_call_operand.vmem [shape: f32[8,64], index: 3, kind: input, shape index: {}]   ;;  %s796_s4 = inlined_call_operand.vmem [shape: f32[1,64], index: 4, kind: input, shape index: {}]   ;;  %s797_s5 = inlined_call_operand.hbm [shape: f32[64,64], index: 5, kind: input, shape index: {}]   ;;  %s798_s6 = inlined_call_operand.vmem [shape: f32[1,64], index: 6, kind: input, shape index: {}]   ;;  %s799_s7 = inlined_call_operand.vmem [shape: f32[2,64], index: 7, kind: input, shape index: {}]   ;;  %s800_s8 = inlined_call_operand.hbm [shape: f32[2,16], index: 8, kind: output, shape index: {}]  }
   0x1   :  { %14 = vsyncpa [#allocation4], 0  ;;  %s676_s27 = smov [#allocation2]   ;;  %s628_s9 = scalar_lea.hbm %s797_s5, 1024 }
   0x2   :  { %s30_s28 = sshll.u32 %s676_s27, 4  ;;  %p629_p0 = scmp.ne.s32.totalorder %s797_s5, %s628_s9  ;;  %s31_s28 = int_to_ptr.vmem [resolvable:$true] %s30_s28 }
   0x3   :  { %p632_p1 = scmp.lt.u32.totalorder %s628_s9, %s797_s5 }
   0x5   :  { %p634_p2 = pnand %p632_p1, %p629_p0 }
   0x7   :  { %637 = shalt.err (!%p634_p2)
}
   0x8   :  { %s638_s14 = scalar_lea.vmem %s31_s28, 1024  ;;  %p643_p4 = scmp.lt.s32.totalorder %s31_s28, %s31_s28 }
   0x9   :  { %p639_p3 = scmp.ne.s32.totalorder %s31_s28, %s638_s14  ;;  %p644_p5 = scmp.lt.s32.totalorder %s638_s14, %s638_s14 }
   0xb   :  { %p645_p6 = por %p644_p5, %p643_p4 }
   0xd   :  { %p646_p7 = pnand %p645_p6, %p639_p3 }
   0xf   :  { %649 = shalt.err (!%p646_p7)
}
  0x10   :  { %s677_s15 = smov 128   ;;  %s678_s16 = smov 8  }
  0x11   :  { %36 = dma.hbm_to_vmem [thread:$0]  %s797_s5, 1024, %s31_s28, [#allocation3], %s677_s15, %s677_s15, %s678_s16  }
  0x12   :  { %672 = dma.done.wait [#allocation3], 1024  }
  0x13   :  { %673 = vsyncadd [#allocation3], 4294966272  ;;  %vm52_vm0 = vcmask 64512   ;;  %v50_v0 = vld [vmem:[%s795_s3] sm:$0xff]  ;;  %v49_v2 = vld [vmem:[%s792_s0 + $0x8] sm:$0xff]  ;;  %vm152_vm1 = vcmask 130048  }
  0x14   :  { %v48_v1 = vld [vmem:[%s792_s0] sm:$0xff]  ;;  %546 = vmatprep.subr.mxu0 %v50_v0  ;;  %v679_v6 = vmov 0   ;;  %v237_v7 = vld [vmem:[#allocation2 + $0x8] sm:$0xff]  ;;  %v238_v8 = vld [vmem:[#allocation2 + $0x10] sm:$0xff]  ;;  %vm245_vm2 = vcmask 523264   ;;  %v680_v37 = vmov 0.0|0.0  }
  0x15   :  { %548 = vmatprep.mubr.msk.f32.mxu0 %vm52_vm0, %v48_v1  ;;  %547 = vmatpush3.msra.mxu0 %v50_v0  ;;  %v44_v3 = vld [vmem:[%s793_s1] sm:$0xff]  ;;  %v239_v9 = vld [vmem:[#allocation2 + $0x18] sm:$0xff]  ;;  %v47_v12 = vld [vmem:[%s794_s2 + $0x8] sm:$0xff]  ;;  %vm681_vm3 = vmmov 0   ;;  %v682_v38 = vmov 0.0   ;;  %vm492_vm5 = vcmask 123904  }
  0x16   :  { %549 = vmatmul.mubr.msk.f32.vlgmr.msra.gmra.mrb[0].mxu0 %vm52_vm0, %v49_v2  ;;  %555 = vmatprep.mubr.msk.f32.mxu1 %vm152_vm1, %v44_v3  ;;  %v46_v4 = vld [vmem:[%s794_s2] sm:$0xff]  ;;  %v599_v11 = vpack.c.bf16 %v239_v9, %v238_v8  ;;  %v241_v14 = vld [vmem:[#allocation2 + $0x28] sm:$0xff]  ;;  %v242_v20 = vld [vmem:[#allocation2 + $0x30] sm:$0xff] }
  0x17   :  { %v236_v5 = vld [vmem:[#allocation2] sm:$0xff]  ;;  %627 = vset.pattern.permute.xlu0 %v679_v6  ;;  %v45_v19 = vld [vmem:[%s793_s1 + $0x8] sm:$0xff]  ;;  %v243_v21 = vld [vmem:[#allocation2 + $0x38] sm:$0xff] }
  0x18   :  { %136 = vperm.xlu0 %627, %v46_v4   ;;  %v595_v10 = vpack.c.bf16 %v237_v7, %v236_v5  ;;  %v240_v13 = vld [vmem:[#allocation2 + $0x20] sm:$0xff]  ;;  %v607_v22 = vpack.c.bf16 %v243_v21, %v242_v20  ;;  %vm617_vm4 = vmpackc.low %vm245_vm2, %vm245_vm2 }
  0x19   :  { %v603_v15 = vpack.c.bf16 %v241_v14, %v240_v13  ;;  %v511_v24 = vld [vmem:[%s796_s4] ss:$0 sm:$0xff] }
  0x1a   :  { %596 = vmatprep.subr.bf16.mxu0 %v595_v10  ;;  %v516_v39 = vld [vmem:[%s798_s6] ss:$0 sm:$0xff]  ;;  %s683_s6 = smov [#allocation5]  }
  0x1b   :  { %598 = vmatpush3.bf16.msra.mxu0 %v595_v10  ;;  %v412_v49 = vld [vmem:[%s799_s7] sm:$0x3]  ;;  %s500_s11 = sshll.u32 %s683_s6, 4  ;;  %s501_s11 = int_to_ptr.vmem [resolvable:$true] %s500_s11 }
  0x1c   :  { %141 = vperm.xlu0 %627, %v47_v12   ;;  %600 = vmatprep.subr.bf16.mxu0 %v599_v11  ;;  %s650_s12 = scalar_lea.vmem %s501_s11, 32  ;;  %p655_p9 = scmp.lt.s32.totalorder %s501_s11, %s501_s11 }
  0x1d   :  { %p651_p8 = scmp.ne.s32.totalorder %s501_s11, %s650_s12  ;;  %p656_p10 = scmp.lt.s32.totalorder %s650_s12, %s650_s12 }
  0x1f   :  { %602 = vmatpush3.bf16.msra.mxu0 %v599_v11  ;;  %p657_p11 = por %p656_p10, %p655_p9 }
  0x20   :  { %604 = vmatprep.subr.bf16.mxu0 %v603_v15 }
  0x21   :  { %p658_p12 = pnand %p657_p11, %p651_p8 }
  0x23   :  { %606 = vmatpush3.bf16.msra.mxu0 %v603_v15 }
  0x24   :  { %608 = vmatprep.subr.bf16.mxu0 %v607_v22 }
  0x27   :  { %610 = vmatpush3.bf16.msra.mxu0 %v607_v22 }
  0x97   :  { %v137_v23 = vpop.permute.xlu0 %136 }
  0x98   :  { %v150_v28 = vmul.f32 %v511_v24, %v137_v23  ;;  %v333_v42 = vmul.f32 %v516_v39, %v137_v23 }
  0x9b   :  { %v142_v25 = vpop.permute.xlu0 %141 }
  0x9c   :  { %v151_v26 = vmul.f32 %v511_v24, %v142_v25  ;;  %v334_v40 = vmul.f32 %v516_v39, %v142_v25 }
  0xe9   :  { %v550_v16 = vpop.f32.mrb[0].mxu0 }
  0xea   :  { %v125_v17 = vpop.f32.mrb[1].mxu0 }
  0xeb   :  { %v591_v18 = vpack.c.bf16 %v550_v16, %v125_v17 }
  0xed   :  { %592 = vmatprep.subr.bf16.mxu1 %v591_v18 }
  0xee   :  { %594 = vmatpush3.bf16.msra.mxu1 %v591_v18 }
  0xf1   :  { %556 = vmatmul.mubr.msk.f32.vlgmr.msra.gmra.mrb[0].mxu1 %vm152_vm1, %v45_v19 }
  0xf2   :  { %581 = vmatprep.mubr.msk.f32.mxu1 %vm152_vm1, %v44_v3 }
 0x1c4   :  { %v557_v27 = vpop.f32.mrb[0].mxu1 }
 0x1c5   :  { %v231_v29 = vadd.f32 %v557_v27, %v151_v26  ;;  %v225_v30 = vpop.f32.mrb[1].mxu1 }
 0x1c6   :  { %v226_v31 = vadd.f32 %v225_v30, %v150_v28 }
 0x1c7   :  { %v235_v33 = vmax.f32 %v231_v29, 0.0 }
 0x1c8   :  { %v234_v32 = vmax.f32 %v226_v31, 0.0 }
 0x1ca   :  { %574 = vmatprep.mubr.msk.f32.mxu0 %vm245_vm2, %v234_v32 }
 0x1cb   :  { %575 = vmatmul.mubr.msk.f32.vlgmr.msra.gmra.mrb[2].mxu0 %vm245_vm2, %v235_v33 }
 0x29e   :  { %v576_v34 = vpop.f32.mrb[2].mxu0 }
 0x29f   :  { %v318_v35 = vpop.f32.mrb[3].mxu0 }
 0x2a0   :  { %v611_v36 = vpack.c.bf16 %v576_v34, %v318_v35 }
 0x2a2   :  { %612 = vmatprep.subr.bf16.mxu1 %v611_v36 }
 0x2a3   :  { %614 = vmatpush3.bf16.msra.mxu1 %v611_v36 }
 0x2a4   :  { %615 = vmatprep.subr.bf16.mxu1 %v680_v37 }
 0x2a6   :  { %582 = vmatmul.mubr.msk.f32.vlgmr.msra.gmra.mrb[2].mxu1 %vm152_vm1, %v45_v19 }
 0x2a7   :  { %588 = vmatprep.mubr.msk.f32.mxu1 %vm681_vm3, %v682_v38 }
 0x379   :  { %v583_v41 = vpop.f32.mrb[2].mxu1 }
 0x37a   :  { %v407_v43 = vadd.f32 %v583_v41, %v334_v40  ;;  %v401_v44 = vpop.f32.mrb[3].mxu1 }
 0x37b   :  { %v402_v45 = vadd.f32 %v401_v44, %v333_v42 }
 0x37c   :  { %v411_v46 = vmax.f32 %v407_v43, 0.0 }
 0x37d   :  { %v410_v47 = vmax.f32 %v402_v45, 0.0 }
 0x37f   :  { %v616_v48 = vpack.c.bf16 %v411_v46, %v410_v47 }
 0x381   :  { %618 = vmatpush3.bf16.xpose.msk.msra.mxu1 %vm617_vm4, %v616_v48 }
 0x388   :  { %589 = vmatmul.mubr.msk.f32.vlgmr.msra.gmra.mrb[4].mxu1 %vm245_vm2, %v412_v49 }
 0x45b   :  { %v488_v50 = vpop.f32.mrb[4].mxu1 }
 0x45c   :  { %v590_v51 = vpop.f32.mrb[5].mxu1  ;;  %493 = vst.msk [vmem:[#allocation5] sm:$0x3] %vm492_vm5, %v488_v50 }
 0x45d   :  { %661 = shalt.err (!%p658_p12)
}
 0x45e   :  { %s662_s7 = scalar_lea.hbm %s800_s8, 32 }
 0x45f   :  { %p663_p13 = scmp.ne.s32.totalorder %s800_s8, %s662_s7  ;;  %p666_p0 = scmp.lt.u32.totalorder %s662_s7, %s800_s8 }
 0x461   :  { %p668_p1 = pnand %p666_p0, %p663_p13 }
 0x463   :  { %671 = shalt.err (!%p668_p1)
}
 0x464   :  { %503 = dma.vmem_to_hbm [thread:$0]  %s501_s11, 32, %s800_s8, [#allocation4]  }
 0x465   :  { %674 = dma.done.wait [#allocation4], 32  }
 0x466   :  { %675 = vsyncadd [#allocation4], 4294967264 }
 0x467   :  { %507 = vsyncpa [#allocation3], 1 }
 0x468   :  { %508 = vsyncpa [#allocation4], 1 }

</bundles_post_ra>
